<compile_context>
chip_gen: v6e
topology: v6e:2x2x1
jax: 0.10.0
libtpu: 0.0.40
codegen_flags: <defaults>
</compile_context>

<pallas_src>
import jax
import jax.numpy as jnp
from jax.experimental import pallas as pl
from jax.experimental.pallas import tpu as pltpu

LANE = 128


def _round_up(x, m):
    return ((x + m - 1) // m) * m


def layer_dims(features, hidden, out_features, div_val=4):
    """Replicates LinearAutoEncoder.__init__ layer-size construction."""
    dims = []
    inp = features
    while inp // div_val > hidden:
        dims.append((inp, inp // div_val))
        inp //= div_val
    dims.append((inp, hidden))           # note: `inp` is NOT updated to hidden
    while inp * div_val < out_features:  # (faithful to the PyTorch code)
        dims.append((inp, inp * div_val))
        inp *= div_val
    return dims


def init_params(key, dims, dtype=jnp.float32):
    """PyTorch nn.Linear default init: U(-1/sqrt(fan_in), 1/sqrt(fan_in))."""
    params = []
    for (fin, fout) in dims:
        key, kw, kb = jax.random.split(key, 3)
        bound = 1.0 / jnp.sqrt(jnp.float32(fin))
        w = jax.random.uniform(kw, (fout, fin), dtype, -bound, bound)
        b = jax.random.uniform(kb, (fout,), dtype, -bound, bound)
        params.append((w, b))
    return params


def prepare_params(params, lane=LANE, compute_dtype=jnp.bfloat16):
    """One-time prep (NOT on the forward path):
      * transpose W -> (Fin, Fout) and cast to bf16 for the MXU,
      * zero-pad every Fin and every intermediate Fout to a lane multiple so
        all intermediate activations are lane-dense (numerically exact),
      * keep the LAST layer's true output width so the kernel writes the real
        output directly (no post-kernel slice),
      * keep biases f32 so the bias+ReLU epilogue stays f32 (v5e-safe).
    """
    n = len(params)
    wts, bs = [], []
    fin_pad = _round_up(params[0][0].shape[1], lane)
    for i, (w, b) in enumerate(params):
        fout, fin = w.shape
        fout_pad = fout if i == n - 1 else _round_up(fout, lane)
        wt = jnp.zeros((fin_pad, fout_pad), compute_dtype)
        wt = wt.at[:fin, :fout].set(jnp.transpose(w).astype(compute_dtype))
        b2 = jnp.zeros((1, fout_pad), jnp.float32)
        b2 = b2.at[:, :fout].set(b.astype(jnp.float32))
        wts.append(wt)
        bs.append(b2)
        fin_pad = fout_pad
    return wts, bs


def _make_fused_kernel(n_layers, compute_dtype):
    """Kernel over one batch tile: refs = (x, W0..Wn-1, b0..bn-1, out)."""
    def kernel(*refs):
        x_ref = refs[0]
        w_refs = refs[1:1 + n_layers]
        b_refs = refs[1 + n_layers:1 + 2 * n_layers]
        o_ref = refs[1 + 2 * n_layers]

        h = x_ref[...]  # bf16 (tm, f0_pad)
        # Statically unrolled layer loop: intermediates stay on-chip.
        for li in range(n_layers):
            # bf16 MXU matmul with f32 accumulation.
            y = jnp.dot(h, w_refs[li][...], preferred_element_type=jnp.float32)
            # f32 bias + ReLU epilogue (VPU).
            y = jnp.maximum(y + b_refs[li][...], 0.0)
            if li + 1 < n_layers:
                h = y.astype(compute_dtype)
            else:
                o_ref[...] = y.astype(o_ref.dtype)
    return kernel


def _choose_tm(n):
    """Pick a batch tile: 128-multiples capped at 512 rows, keeping >=4 grid
    steps when the batch allows so DMA pipelines under compute and work shards
    across v7x's two TensorCores.  Returns (tm, padded_batch)."""
    if n <= 128:
        tm = _round_up(max(n, 8), 8)
        return tm, tm
    n_tiles = _round_up(n, 128) // 128
    tm_tiles = min(max(1, n_tiles // 4), 512 // 128) if n_tiles >= 4 else 1
    tm = tm_tiles * 128
    return tm, _round_up(n, tm)


def _vmem_estimate(tm, f0_pad, wts, bs, out_width):
    x_blk = tm * f0_pad * 2                       # bf16 input tile
    o_blk = tm * out_width * 4                    # f32 output tile
    wb = sum(w.size * w.dtype.itemsize for w in wts)
    wb += sum(b.size * b.dtype.itemsize for b in bs)
    widest = max([f0_pad] + [w.shape[1] for w in wts])
    act = tm * widest * (4 + 2) * 2               # f32 + bf16 intermediates
    # x/out double-buffered, weights/biases single-buffered (pl.Buffered(1)).
    return 2 * (x_blk + o_blk) + wb + act


def _fused_forward(x, wts, bs):
    n_layers = len(wts)
    n, f0 = x.shape
    f0_pad = wts[0].shape[0]
    out_width = wts[-1].shape[1]
    compute_dtype = wts[0].dtype

    tm, n_pad = _choose_tm(n)
    grid = (n_pad // tm,)

    # Pad features to the lane-dense width of the padded weights, pad ragged
    # batches to a tile multiple, and cast to bf16 (halves x DMA bytes).
    xp = x
    if (n_pad != n) or (f0_pad != f0):
        xp = jnp.pad(x, ((0, n_pad - n), (0, f0_pad - f0)))
    xp = xp.astype(compute_dtype)

    in_specs = [pl.BlockSpec((tm, f0_pad), lambda i: (i, 0))]
    # Weights/biases have a constant index_map across the grid: single-buffer
    # them to halve their resident VMEM footprint.
    for wt in wts:
        in_specs.append(pl.BlockSpec(wt.shape, lambda i: (0, 0),
                                     pipeline_mode=pl.Buffered(1)))
    for b in bs:
        in_specs.append(pl.BlockSpec(b.shape, lambda i: (0, 0),
                                     pipeline_mode=pl.Buffered(1)))
    out_spec = pl.BlockSpec((tm, out_width), lambda i: (i, 0))

    flops = 0
    bytes_accessed = xp.size * xp.dtype.itemsize + n_pad * out_width * 4
    for wt, b in zip(wts, bs):
        fin, fout = wt.shape
        flops += 2 * n_pad * fin * fout
        bytes_accessed += wt.size * wt.dtype.itemsize + b.size * b.dtype.itemsize

    # Explicit VMEM budget: generous but never above v7x's 64 MiB physical.
    vmem_limit = min(64 * 1024 * 1024,
                     max(32 * 1024 * 1024,
                         int(1.5 * _vmem_estimate(tm, f0_pad, wts, bs,
                                                  out_width))))

    y = pl.pallas_call(
        _make_fused_kernel(n_layers, compute_dtype),
        out_shape=jax.ShapeDtypeStruct((n_pad, out_width), jnp.float32),
        grid=grid,
        in_specs=in_specs,
        out_specs=out_spec,
        compiler_params=pltpu.CompilerParams(
            dimension_semantics=("parallel",),
            vmem_limit_bytes=vmem_limit),
        cost_estimate=pl.CostEstimate(
            flops=flops, transcendentals=0, bytes_accessed=bytes_accessed),
    )(xp, *wts, *bs)

    if n_pad != n:
        y = y[:n]
    return y


linear_autoencoder_forward = jax.jit(_fused_forward)


def reference_forward(x, params):
    for (w, b) in params:
        x = jnp.maximum(x @ w.T + b, 0.0)
    return x


if __name__ == "__main__":
    # Config: features=256, hidden=16, out_features=256, div_val=4
    # -> layers: Linear(256,64)+ReLU, Linear(64,16)+ReLU
    features, hidden, out_features, div_val = 256, 16, 256, 4
    batch = 256   # -> two 128-row batch tiles (one per v7x TensorCore)

    dims = layer_dims(features, hidden, out_features, div_val)

    key = jax.random.PRNGKey(0)
    key, kx = jax.random.split(key)
    x = jax.random.normal(kx, (batch, features), jnp.float32)
    params = init_params(key, dims)

    wts, bs = prepare_params(params)

    y = linear_autoencoder_forward(x, wts, bs)
    y = jax.block_until_ready(y)

    y_ref = reference_forward(x, params)
    assert y.shape == y_ref.shape, (y.shape, y_ref.shape)
    # bf16 MXU path (f32 accumulate + f32 epilogue): tolerance loosened vs. f32.
    err = float(jnp.max(jnp.abs(y - y_ref)))
    assert jnp.allclose(y, y_ref, atol=3e-2, rtol=3e-2), err

    print("KERNEL_OK")
</pallas_src>

<mosaic_0001>
module attributes {stable_mosaic.version = 11 : i64} {
  func.func @kernel(%arg0: i32, %arg1: memref<128x256xbf16, #tpu.memory_space<vmem>>, %arg2: memref<256x128xbf16, #tpu.memory_space<vmem>>, %arg3: memref<128x16xbf16, #tpu.memory_space<vmem>>, %arg4: memref<1x128xf32, #tpu.memory_space<vmem>>, %arg5: memref<1x16xf32, #tpu.memory_space<vmem>>, %arg6: memref<128x16xf32, #tpu.memory_space<vmem>>) attributes {dimension_semantics = [#tpu.dimension_semantics<parallel>], iteration_bounds = array<i64: 2>, scalar_prefetch = 0 : i64, scratch_operands = 0 : i64, tpu.core_type = #tpu.core_type<tc>, window_params = [{transform_indices = @transform_0, window_bounds = array<i64: 128, 256>}, {pipeline_mode = #tpu.pipeline_mode<synchronous>, transform_indices = @transform_1, window_bounds = array<i64: 256, 128>}, {pipeline_mode = #tpu.pipeline_mode<synchronous>, transform_indices = @transform_2, window_bounds = array<i64: 128, 16>}, {pipeline_mode = #tpu.pipeline_mode<synchronous>, transform_indices = @transform_3, window_bounds = array<i64: 1, 128>}, {pipeline_mode = #tpu.pipeline_mode<synchronous>, transform_indices = @transform_4, window_bounds = array<i64: 1, 16>}, {transform_indices = @transform_5, window_bounds = array<i64: 128, 16>}]} {
    %c0 = arith.constant 0 : index
    %c0_0 = arith.constant 0 : index
    %0 = vector.load %arg1[%c0, %c0_0] : memref<128x256xbf16, #tpu.memory_space<vmem>>, vector<128x256xbf16>
    %c0_1 = arith.constant 0 : index
    %c0_2 = arith.constant 0 : index
    %1 = vector.load %arg2[%c0_1, %c0_2] : memref<256x128xbf16, #tpu.memory_space<vmem>>, vector<256x128xbf16>
    %cst = arith.constant dense<0.000000e+00> : vector<128x128xf32>
    %2 = tpu.matmul %0, %1, %cst {dimension_numbers = #tpu.dot_dimension_numbers<[1], [0], [0], [1], [0, 0, 1, 1], [], []>} : vector<128x256xbf16>, vector<256x128xbf16>, vector<128x128xf32> -> vector<128x128xf32>
    %c0_3 = arith.constant 0 : index
    %c0_4 = arith.constant 0 : index
    %3 = vector.load %arg4[%c0_3, %c0_4] : memref<1x128xf32, #tpu.memory_space<vmem>>, vector<1x128xf32>
    %4 = vector.broadcast %3 : vector<1x128xf32> to vector<128x128xf32>
    %5 = arith.addf %2, %4 : vector<128x128xf32>
    %cst_5 = arith.constant 0.000000e+00 : f32
    %6 = vector.broadcast %cst_5 : f32 to vector<128x128xf32>
    %7 = arith.maximumf %5, %6 : vector<128x128xf32>
    %8 = arith.truncf %7 : vector<128x128xf32> to vector<128x128xbf16>
    %c0_6 = arith.constant 0 : index
    %c0_7 = arith.constant 0 : index
    %9 = vector.load %arg3[%c0_6, %c0_7] : memref<128x16xbf16, #tpu.memory_space<vmem>>, vector<128x16xbf16>
    %cst_8 = arith.constant dense<0.000000e+00> : vector<128x16xf32>
    %10 = tpu.matmul %8, %9, %cst_8 {dimension_numbers = #tpu.dot_dimension_numbers<[1], [0], [0], [1], [0, 0, 1, 1], [], []>} : vector<128x128xbf16>, vector<128x16xbf16>, vector<128x16xf32> -> vector<128x16xf32>
    %c0_9 = arith.constant 0 : index
    %c0_10 = arith.constant 0 : index
    %11 = vector.load %arg5[%c0_9, %c0_10] : memref<1x16xf32, #tpu.memory_space<vmem>>, vector<1x16xf32>
    %12 = vector.broadcast %11 : vector<1x16xf32> to vector<128x16xf32>
    %13 = arith.addf %10, %12 : vector<128x16xf32>
    %cst_11 = arith.constant 0.000000e+00 : f32
    %14 = vector.broadcast %cst_11 : f32 to vector<128x16xf32>
    %15 = arith.maximumf %13, %14 : vector<128x16xf32>
    %c0_12 = arith.constant 0 : index
    %c0_13 = arith.constant 0 : index
    %16 = vector.load %arg6[%c0_12, %c0_13] : memref<128x16xf32, #tpu.memory_space<vmem>>, vector<128x16xf32>
    tpu.vector_store %arg6[%c0_12, %c0_13], %15 {strides = array<i32>} : memref<128x16xf32, #tpu.memory_space<vmem>>, vector<128x16xf32>,
    return
  }
  func.func @transform_0(%arg0: i32) -> (i32, i32) {
    %c0_i32 = arith.constant 0 : i32
    %c0_i32_0 = arith.constant 0 : i32
    return %arg0, %c0_i32 : i32, i32
  }
  func.func @transform_1(%arg0: i32) -> (i32, i32) {
    %c0_i32 = arith.constant 0 : i32
    %c0_i32_0 = arith.constant 0 : i32
    %c0_i32_1 = arith.constant 0 : i32
    return %c0_i32, %c0_i32_0 : i32, i32
  }
  func.func @transform_2(%arg0: i32) -> (i32, i32) {
    %c0_i32 = arith.constant 0 : i32
    %c0_i32_0 = arith.constant 0 : i32
    %c0_i32_1 = arith.constant 0 : i32
    return %c0_i32, %c0_i32_0 : i32, i32
  }
  func.func @transform_3(%arg0: i32) -> (i32, i32) {
    %c0_i32 = arith.constant 0 : i32
    %c0_i32_0 = arith.constant 0 : i32
    %c0_i32_1 = arith.constant 0 : i32
    return %c0_i32, %c0_i32_0 : i32, i32
  }
  func.func @transform_4(%arg0: i32) -> (i32, i32) {
    %c0_i32 = arith.constant 0 : i32
    %c0_i32_0 = arith.constant 0 : i32
    %c0_i32_1 = arith.constant 0 : i32
    return %c0_i32, %c0_i32_0 : i32, i32
  }
  func.func @transform_5(%arg0: i32) -> (i32, i32) {
    %c0_i32 = arith.constant 0 : i32
    %c0_i32_0 = arith.constant 0 : i32
    return %arg0, %c0_i32 : i32, i32
  }
}

</mosaic_0001>

<bundles_post_ra>
// kernel: _fused_forward.1
= control target key start
LH: loop header
LB: loop body
LE: loop exit
PB: predicated region body
PF: predicated region fallthrough
CT: control target
= control target key end

     0   :  { %s1102_s18 = smov 0   ;;  %s1292_s0 = inlined_call_operand.vmem [shape: bf16[256,256], index: 0, kind: input, shape index: {}]   ;;  %s1293_s1 = inlined_call_operand.vmem [shape: bf16[256,128], index: 1, kind: input, shape index: {}]   ;;  %s1294_s2 = inlined_call_operand.vmem [shape: bf16[128,16], index: 2, kind: input, shape index: {}]   ;;  %s1295_s3 = inlined_call_operand.vmem [shape: f32[1,128], index: 3, kind: input, shape index: {}]   ;;  %s1296_s4 = inlined_call_operand.vmem [shape: f32[1,16], index: 4, kind: input, shape index: {}]   ;;  %s1297_s5 = inlined_call_operand.vmem [shape: f32[256,16], index: 5, kind: output, shape index: {}]  }
   0x1 LB: > { %s841_s19 = sadd.s32 4294967295, %s1070_s18   ;;  %p845_p0 = scmp.ge.s32.totalorder %s1070_s18, 1  ;;  %s1070_s18 = sphi %s1102_s18, %s15_s18  }
   0x2   : > { %p189_p1 = scmp.lt.s32.totalorder %s1070_s18, 3 }
   0x4   : > { %p190_p2 = pnand %p845_p0, %p189_p1 }
   0x5   : > { %s846_s22 = sshll.u32 (!%p190_p2), %s841_s19, 4 }
   0x6   : > { %193 = sbr.rel (%p190_p2) target bundleno = 511 (0x1ff), region = 40  ;;  %p219_p3 = scmp.lt.s32.totalorder (!%p190_p2), %s846_s22, 31 }
   0xb   : > { %v1016_v0 = vld [vmem:[%s1293_s1 + $0x78] sm:$0xff]   ;;  %v1018_v2 = vld [vmem:[%s1293_s1 + $0x70] sm:$0xff]   ;;  %v1020_v4 = vld [vmem:[%s1293_s1 + $0x68] sm:$0xff]   ;;  %s1299_s22 = smov (!%p219_p3, %s846_s22), 31  ;;  %vm768_vm0 = vcmask 130048  }
   0xc   : > { %v1017_v1 = vld [vmem:[%s1293_s1 + $0x38] sm:$0xff]   ;;  %896 = vmatprep.subr.bf16.mxu0 %v1016_v0  ;;  %v1019_v3 = vld [vmem:[%s1293_s1 + $0x30] sm:$0xff]   ;;  %v1021_v5 = vld [vmem:[%s1293_s1 + $0x28] sm:$0xff]   ;;  %s895_s12 = sshll.u32 %s1299_s22, 3 }
   0xd   : > { %897 = vmatpush3.bf16.msra.mxu0 %v1017_v1  ;;  %v1022_v6 = vld [vmem:[%s1293_s1 + $0x60] sm:$0xff]   ;;  %v1024_v8 = vld [vmem:[%s1293_s1 + $0x58] sm:$0xff]   ;;  %s1145_s17 = scalar_lea.vmem %s1292_s0, %s895_s12  ;;  %v1026_v10 = vld [vmem:[%s1293_s1 + $0x50] sm:$0xff]   ;;  %s1240_s9 = scalar_lea.vmem %s1297_s5, %s895_s12 }
   0xe   : > { %898 = vmatprep.subr.bf16.mxu0 %v1018_v2  ;;  %v1023_v7 = vld [vmem:[%s1293_s1 + $0x20] sm:$0xff]   ;;  %v1025_v9 = vld [vmem:[%s1293_s1 + $0x18] sm:$0xff]   ;;  %v1027_v12 = vld [vmem:[%s1293_s1 + $0x10] sm:$0xff]  }
   0xf   : > { %v1034_v11 = vld [vmem:[%s1145_s17 + $0x4] ss:$8 sps:$4 sm:$0xff]   ;;  %v1056_v17 = vld [vmem:[%s1294_s2 + $0x38] sm:$0xff]   ;;  %v1032_v18 = vld [vmem:[%s1145_s17] ss:$8 sps:$4 sm:$0xff]  }
  0x10   : > { %495 = vmatprep.mubr.bf16.mxu0 %v1034_v11  ;;  %v1028_v13 = vld [vmem:[%s1293_s1 + $0x48] sm:$0xff]   ;;  %v1030_v15 = vld [vmem:[%s1293_s1 + $0x40] sm:$0xff]   ;;  %v1057_v19 = vld [vmem:[%s1294_s2 + $0x30] sm:$0xff]   ;;  %976 = vmatprep.subr.bf16.mxu1 %v1056_v17 }
  0x11   : > { %899 = vmatpush3.bf16.msra.mxu0 %v1019_v3  ;;  %v1029_v14 = vld [vmem:[%s1293_s1 + $0x8] sm:$0xff]   ;;  %v1031_v16 = vld [vmem:[%s1293_s1] sm:$0xff]   ;;  %v1035_v20 = vld [vmem:[%s1145_s17 + $0x14] ss:$8 sps:$4 sm:$0xff]   ;;  %977 = vmatpush3.bf16.msra.mxu1 %v1056_v17 }
  0x12   : > { %900 = vmatprep.subr.bf16.mxu0 %v1020_v4  ;;  %v1058_v21 = vld [vmem:[%s1294_s2 + $0x28] sm:$0xff]   ;;  %978 = vmatprep.subr.bf16.mxu1 %v1057_v19  ;;  %v1037_v22 = vld [vmem:[%s1145_s17 + $0x10] ss:$8 sps:$4 sm:$0xff]   ;;  %v1041_v25 = vld [vmem:[%s1145_s17 + $0x34] ss:$8 sps:$4 sm:$0xff]  }
  0x13   : > { %v1038_v23 = vld [vmem:[%s1145_s17 + $0x24] ss:$8 sps:$4 sm:$0xff]   ;;  %v1040_v24 = vld [vmem:[%s1145_s17 + $0x20] ss:$8 sps:$4 sm:$0xff]   ;;  %v1043_v26 = vld [vmem:[%s1145_s17 + $0x30] ss:$8 sps:$4 sm:$0xff]  }
  0x14   : > { %v1044_v27 = vld [vmem:[%s1145_s17 + $0x44] ss:$8 sps:$4 sm:$0xff]   ;;  %v1046_v28 = vld [vmem:[%s1145_s17 + $0x40] ss:$8 sps:$4 sm:$0xff]   ;;  %v1047_v29 = vld [vmem:[%s1145_s17 + $0x54] ss:$8 sps:$4 sm:$0xff]  }
  0x15   : > { %901 = vmatpush3.bf16.msra.mxu0 %v1021_v5  ;;  %979 = vmatpush3.bf16.msra.mxu1 %v1057_v19  ;;  %v1049_v30 = vld [vmem:[%s1145_s17 + $0x50] ss:$8 sps:$4 sm:$0xff]   ;;  %v1050_v31 = vld [vmem:[%s1145_s17 + $0x64] ss:$8 sps:$4 sm:$0xff]   ;;  %v1052_v32 = vld [vmem:[%s1145_s17 + $0x60] ss:$8 sps:$4 sm:$0xff]  }
  0x16   : > { %902 = vmatprep.subr.bf16.mxu0 %v1022_v6  ;;  %980 = vmatprep.subr.bf16.mxu1 %v1058_v21  ;;  %v1053_v33 = vld [vmem:[%s1145_s17 + $0x74] ss:$8 sps:$4 sm:$0xff]   ;;  %v1055_v34 = vld [vmem:[%s1145_s17 + $0x70] ss:$8 sps:$4 sm:$0xff]   ;;  %v1059_v35 = vld [vmem:[%s1294_s2 + $0x20] sm:$0xff]  }
  0x17   : > { %v1060_v36 = vld [vmem:[%s1294_s2 + $0x18] sm:$0xff]   ;;  %v1061_v37 = vld [vmem:[%s1294_s2 + $0x10] sm:$0xff]   ;;  %v1062_v38 = vld [vmem:[%s1294_s2 + $0x8] sm:$0xff]  }
  0x18   : > { %v1063_v39 = vld [vmem:[%s1294_s2] sm:$0xff]  }
  0x19   : > { %903 = vmatpush3.bf16.msra.mxu0 %v1023_v7  ;;  %981 = vmatpush3.bf16.msra.mxu1 %v1058_v21  ;;  %v1211_v44 = vld [vmem:[%s1295_s3] ss:$0 sm:$0xff] }
  0x1a   : > { %904 = vmatprep.subr.bf16.mxu0 %v1024_v8  ;;  %982 = vmatprep.subr.bf16.mxu1 %v1059_v35 }
  0x1d   : > { %905 = vmatpush3.bf16.msra.mxu0 %v1025_v9  ;;  %983 = vmatpush3.bf16.msra.mxu1 %v1059_v35 }
  0x1e   : > { %906 = vmatprep.subr.bf16.mxu0 %v1026_v10  ;;  %984 = vmatprep.subr.bf16.mxu1 %v1060_v36 }
  0x21   : > { %907 = vmatpush3.bf16.msra.mxu0 %v1027_v12  ;;  %985 = vmatpush3.bf16.msra.mxu1 %v1060_v36 }
  0x22   : > { %908 = vmatprep.subr.bf16.mxu0 %v1028_v13  ;;  %986 = vmatprep.subr.bf16.mxu1 %v1061_v37 }
  0x25   : > { %909 = vmatpush3.bf16.msra.mxu0 %v1029_v14  ;;  %987 = vmatpush3.bf16.msra.mxu1 %v1061_v37 }
  0x26   : > { %910 = vmatprep.subr.bf16.mxu0 %v1030_v15  ;;  %988 = vmatprep.subr.bf16.mxu1 %v1062_v38 }
  0x29   : > { %911 = vmatpush3.bf16.msra.mxu0 %v1031_v16  ;;  %989 = vmatpush3.bf16.msra.mxu1 %v1062_v38 }
  0x2a   : > { %990 = vmatprep.subr.bf16.mxu1 %v1063_v39 }
  0x2c   : > { %496 = vmatmul.mubr.bf16.vlgmr.msra.gmra.mxu0 %v1032_v18 }
  0x2d   : > { %503 = vmatprep.mubr.bf16.mxu0 %v1035_v20  ;;  %991 = vmatpush3.bf16.msra.mxu1 %v1063_v39 }
  0x34   : > { %504 = vmatmul.mubr.bf16.gmra.mxu0 %v1037_v22 }
  0x35   : > { %511 = vmatprep.mubr.bf16.mxu0 %v1038_v23 }
  0x3c   : > { %512 = vmatmul.mubr.bf16.gmra.mxu0 %v1040_v24 }
  0x3d   : > { %519 = vmatprep.mubr.bf16.mxu0 %v1041_v25 }
  0x44   : > { %520 = vmatmul.mubr.bf16.gmra.mxu0 %v1043_v26 }
  0x45   : > { %527 = vmatprep.mubr.bf16.mxu0 %v1044_v27 }
  0x4c   : > { %528 = vmatmul.mubr.bf16.gmra.mxu0 %v1046_v28 }
  0x4d   : > { %535 = vmatprep.mubr.bf16.mxu0 %v1047_v29 }
  0x54   : > { %536 = vmatmul.mubr.bf16.gmra.mxu0 %v1049_v30 }
  0x55   : > { %543 = vmatprep.mubr.bf16.mxu0 %v1050_v31 }
  0x5c   : > { %544 = vmatmul.mubr.bf16.gmra.mxu0 %v1052_v32 }
  0x5d   : > { %551 = vmatprep.mubr.bf16.mxu0 %v1053_v33 }
  0x64   : > { %552 = vmatmul.mubr.bf16.gmra.mxu0 %v1055_v34 }
  0xec   : > { %v912_v40 = vpop.f32.mrf.mxu0 }
  0xee   : > { %v913_v41 = vpop.f32.mrf.mxu0 }
  0xef   : > { %v914_v42 = vadd.f32 %v913_v41, %v912_v40 }
  0xf0   : > { %v915_v43 = vpop.f32.mrf.mxu0 }
  0xf1   : > { %v498_v47 = vadd.f32 %v914_v42, %v1211_v44 }
  0xf2   : > { %v916_v45 = vpop.f32.mrf.mxu0 }
  0xf3   : > { %v917_v46 = vadd.f32 %v916_v45, %v915_v43  ;;  %v560_v52 = vmax.f32 %v498_v47, 0.0 }
  0xf4   : > { %v918_v48 = vpop.f32.mrf.mxu0 }
  0xf5   : > { %v501_v49 = vadd.f32 %v917_v46, %v1211_v44 }
  0xf6   : > { %v919_v50 = vpop.f32.mrf.mxu0 }
  0xf7   : > { %v920_v51 = vadd.f32 %v919_v50, %v918_v48  ;;  %v561_v53 = vmax.f32 %v501_v49, 0.0 }
  0xf8   : > { %v921_v54 = vpop.f32.mrf.mxu0 }
  0xf9   : > { %v576_v55 = vpack.c.bf16 %v561_v53, %v560_v52  ;;  %v506_v57 = vadd.f32 %v920_v51, %v1211_v44 }
  0xfa   : > { %v922_v56 = vpop.f32.mrf.mxu0 }
  0xfb   : > { %v923_v58 = vadd.f32 %v922_v56, %v921_v54  ;;  %992 = vmatprep.mubr.bf16.mxu1 %v576_v55  ;;  %v562_v62 = vmax.f32 %v506_v57, 0.0 }
  0xfc   : > { %v924_v59 = vpop.f32.mrf.mxu0 }
  0xfd   : > { %v509_v60 = vadd.f32 %v923_v58, %v1211_v44 }
  0xfe   : > { %v925_v61 = vpop.f32.mrf.mxu0 }
  0xff   : > { %v563_v63 = vmax.f32 %v509_v60, 0.0  ;;  %v926_v0 = vadd.f32 %v925_v61, %v924_v59 }
 0x100   : > { %v927_v1 = vpop.f32.mrf.mxu0 }
 0x101   : > { %v577_v2 = vpack.c.bf16 %v563_v63, %v562_v62  ;;  %v514_v4 = vadd.f32 %v926_v0, %v1211_v44 }
 0x102   : > { %v928_v3 = vpop.f32.mrf.mxu0 }
 0x103   : > { %v929_v5 = vadd.f32 %v928_v3, %v927_v1  ;;  %993 = vmatmul.mubr.bf16.vlgmr.msra.gmra.mxu1 %v577_v2  ;;  %v564_v9 = vmax.f32 %v514_v4, 0.0  ;;  %v1232_v2 = vld [vmem:[%s1296_s4] ss:$0 sm:$0xff] }
 0x104   : > { %v930_v6 = vpop.f32.mrf.mxu0 }
 0x105   : > { %v517_v7 = vadd.f32 %v929_v5, %v1211_v44 }
 0x106   : > { %v931_v8 = vpop.f32.mrf.mxu0 }
 0x107   : > { %v565_v10 = vmax.f32 %v517_v7, 0.0  ;;  %v932_v11 = vadd.f32 %v931_v8, %v930_v6 }
 0x108   : > { %v933_v12 = vpop.f32.mrf.mxu0 }
 0x109   : > { %v578_v13 = vpack.c.bf16 %v565_v10, %v564_v9  ;;  %v522_v15 = vadd.f32 %v932_v11, %v1211_v44 }
 0x10a   : > { %v934_v14 = vpop.f32.mrf.mxu0 }
 0x10b   : > { %v935_v16 = vadd.f32 %v934_v14, %v933_v12  ;;  %996 = vmatprep.mubr.bf16.mxu1 %v578_v13  ;;  %v566_v20 = vmax.f32 %v522_v15, 0.0 }
 0x10c   : > { %v936_v17 = vpop.f32.mrf.mxu0 }
 0x10d   : > { %v525_v18 = vadd.f32 %v935_v16, %v1211_v44 }
 0x10e   : > { %v937_v19 = vpop.f32.mrf.mxu0 }
 0x10f   : > { %v567_v21 = vmax.f32 %v525_v18, 0.0  ;;  %v938_v22 = vadd.f32 %v937_v19, %v936_v17 }
 0x110   : > { %v939_v23 = vpop.f32.mrf.mxu0 }
 0x111   : > { %v579_v24 = vpack.c.bf16 %v567_v21, %v566_v20  ;;  %v530_v26 = vadd.f32 %v938_v22, %v1211_v44 }
 0x112   : > { %v940_v25 = vpop.f32.mrf.mxu0 }
 0x113   : > { %v941_v27 = vadd.f32 %v940_v25, %v939_v23  ;;  %997 = vmatmul.mubr.bf16.gmra.mxu1 %v579_v24  ;;  %v568_v31 = vmax.f32 %v530_v26, 0.0 }
 0x114   : > { %v942_v28 = vpop.f32.mrf.mxu0 }
 0x115   : > { %v533_v29 = vadd.f32 %v941_v27, %v1211_v44 }
 0x116   : > { %v943_v30 = vpop.f32.mrf.mxu0 }
 0x117   : > { %v569_v32 = vmax.f32 %v533_v29, 0.0  ;;  %v944_v33 = vadd.f32 %v943_v30, %v942_v28 }
 0x118   : > { %v945_v34 = vpop.f32.mrf.mxu0 }
 0x119   : > { %v580_v35 = vpack.c.bf16 %v569_v32, %v568_v31  ;;  %v538_v37 = vadd.f32 %v944_v33, %v1211_v44 }
 0x11a   : > { %v946_v36 = vpop.f32.mrf.mxu0 }
 0x11b   : > { %v947_v38 = vadd.f32 %v946_v36, %v945_v34  ;;  %1000 = vmatprep.mubr.bf16.mxu1 %v580_v35  ;;  %v570_v42 = vmax.f32 %v538_v37, 0.0 }
 0x11c   : > { %v948_v39 = vpop.f32.mrf.mxu0 }
 0x11d   : > { %v541_v40 = vadd.f32 %v947_v38, %v1211_v44 }
 0x11e   : > { %v949_v41 = vpop.f32.mrf.mxu0 }
 0x11f   : > { %v571_v43 = vmax.f32 %v541_v40, 0.0  ;;  %v950_v45 = vadd.f32 %v949_v41, %v948_v39 }
 0x120   : > { %v951_v46 = vpop.f32.mrf.mxu0 }
 0x121   : > { %v581_v47 = vpack.c.bf16 %v571_v43, %v570_v42  ;;  %v546_v49 = vadd.f32 %v950_v45, %v1211_v44 }
 0x122   : > { %v952_v48 = vpop.f32.mrf.mxu0 }
 0x123   : > { %v953_v50 = vadd.f32 %v952_v48, %v951_v46  ;;  %1001 = vmatmul.mubr.bf16.gmra.mxu1 %v581_v47  ;;  %v572_v54 = vmax.f32 %v546_v49, 0.0 }
 0x124   : > { %v954_v51 = vpop.f32.mrf.mxu0 }
 0x125   : > { %v549_v52 = vadd.f32 %v953_v50, %v1211_v44 }
 0x126   : > { %v955_v53 = vpop.f32.mrf.mxu0 }
 0x127   : > { %v573_v55 = vmax.f32 %v549_v52, 0.0  ;;  %v956_v56 = vadd.f32 %v955_v53, %v954_v51 }
 0x128   : > { %v957_v57 = vpop.f32.mrf.mxu0 }
 0x129   : > { %v582_v58 = vpack.c.bf16 %v573_v55, %v572_v54  ;;  %v554_v60 = vadd.f32 %v956_v56, %v1211_v44 }
 0x12a   : > { %v958_v59 = vpop.f32.mrf.mxu0 }
 0x12b   : > { %v959_v61 = vadd.f32 %v958_v59, %v957_v57  ;;  %1004 = vmatprep.mubr.bf16.mxu1 %v582_v58  ;;  %v574_v63 = vmax.f32 %v554_v60, 0.0 }
 0x12d   : > { %v557_v62 = vadd.f32 %v959_v61, %v1211_v44 }
 0x12f   : > { %v575_v0 = vmax.f32 %v557_v62, 0.0 }
 0x131   : > { %v583_v1 = vpack.c.bf16 %v575_v0, %v574_v63 }
 0x133   : > { %1005 = vmatmul.mubr.bf16.gmra.mxu1 %v583_v1 }
 0x1c3   : > { %v994_v3 = vpop.f32.mrf.mxu1 }
 0x1c4   : > { %v698_v4 = vadd.f32 %v994_v3, %v1232_v2 }
 0x1c5   : > { %v689_v44 = vpop.f32.mrf.mxu1 }
 0x1c6   : > { %v754_v5 = vmax.f32 %v698_v4, 0.0  ;;  %v690_v6 = vadd.f32 %v1232_v2, %v689_v44 }
 0x1c7   : > { %v995_v7 = vpop.f32.mrf.mxu1 }
 0x1c8   : > { %771 = vst.msk [vmem:[%s1240_s9 + $0x10] sm:$0xff] %vm768_vm0, %v754_v5  ;;  %v752_v8 = vmax.f32 %v690_v6, 0.0  ;;  %v701_v9 = vadd.f32 %v995_v7, %v1232_v2 }
 0x1c9   : > { %v692_v10 = vpop.f32.mrf.mxu1 }
 0x1ca   : > { %769 = vst.msk [vmem:[%s1240_s9] sm:$0xff] %vm768_vm0, %v752_v8  ;;  %v755_v11 = vmax.f32 %v701_v9, 0.0  ;;  %v693_v12 = vadd.f32 %v1232_v2, %v692_v10 }
 0x1cc   : > { %772 = vst.msk [vmem:[%s1240_s9 + $0x18] sm:$0xff] %vm768_vm0, %v755_v11  ;;  %v753_v13 = vmax.f32 %v693_v12, 0.0 }
 0x1ce   : > { %770 = vst.msk [vmem:[%s1240_s9 + $0x8] sm:$0xff] %vm768_vm0, %v753_v13 }
 0x1d3   : > { %v998_v14 = vpop.f32.mrf.mxu1 }
 0x1d4   : > { %v714_v15 = vadd.f32 %v998_v14, %v1232_v2 }
 0x1d5   : > { %v705_v16 = vpop.f32.mrf.mxu1 }
 0x1d6   : > { %v758_v17 = vmax.f32 %v714_v15, 0.0  ;;  %v706_v18 = vadd.f32 %v1232_v2, %v705_v16 }
 0x1d7   : > { %v999_v19 = vpop.f32.mrf.mxu1 }
 0x1d8   : > { %775 = vst.msk [vmem:[%s1240_s9 + $0x30] sm:$0xff] %vm768_vm0, %v758_v17  ;;  %v756_v20 = vmax.f32 %v706_v18, 0.0  ;;  %v717_v21 = vadd.f32 %v999_v19, %v1232_v2 }
 0x1d9   : > { %v708_v22 = vpop.f32.mrf.mxu1 }
 0x1da   : > { %773 = vst.msk [vmem:[%s1240_s9 + $0x20] sm:$0xff] %vm768_vm0, %v756_v20  ;;  %v759_v23 = vmax.f32 %v717_v21, 0.0  ;;  %v709_v24 = vadd.f32 %v1232_v2, %v708_v22 }
 0x1dc   : > { %776 = vst.msk [vmem:[%s1240_s9 + $0x38] sm:$0xff] %vm768_vm0, %v759_v23  ;;  %v757_v25 = vmax.f32 %v709_v24, 0.0 }
 0x1de   : > { %774 = vst.msk [vmem:[%s1240_s9 + $0x28] sm:$0xff] %vm768_vm0, %v757_v25 }
 0x1e3   : > { %v1002_v26 = vpop.f32.mrf.mxu1 }
 0x1e4   : > { %v730_v27 = vadd.f32 %v1002_v26, %v1232_v2 }
 0x1e5   : > { %v721_v28 = vpop.f32.mrf.mxu1 }
 0x1e6   : > { %v762_v29 = vmax.f32 %v730_v27, 0.0  ;;  %v722_v30 = vadd.f32 %v1232_v2, %v721_v28 }
 0x1e7   : > { %v1003_v31 = vpop.f32.mrf.mxu1 }
 0x1e8   : > { %779 = vst.msk [vmem:[%s1240_s9 + $0x50] sm:$0xff] %vm768_vm0, %v762_v29  ;;  %v760_v32 = vmax.f32 %v722_v30, 0.0  ;;  %v733_v33 = vadd.f32 %v1003_v31, %v1232_v2 }
 0x1e9   : > { %v724_v34 = vpop.f32.mrf.mxu1 }
 0x1ea   : > { %777 = vst.msk [vmem:[%s1240_s9 + $0x40] sm:$0xff] %vm768_vm0, %v760_v32  ;;  %v763_v35 = vmax.f32 %v733_v33, 0.0  ;;  %v725_v36 = vadd.f32 %v1232_v2, %v724_v34 }
 0x1ec   : > { %780 = vst.msk [vmem:[%s1240_s9 + $0x58] sm:$0xff] %vm768_vm0, %v763_v35  ;;  %v761_v37 = vmax.f32 %v725_v36, 0.0 }
 0x1ee   : > { %778 = vst.msk [vmem:[%s1240_s9 + $0x48] sm:$0xff] %vm768_vm0, %v761_v37 }
 0x1f3   : > { %v1006_v38 = vpop.f32.mrf.mxu1 }
 0x1f4   : > { %v746_v39 = vadd.f32 %v1006_v38, %v1232_v2 }
 0x1f5   : > { %v737_v40 = vpop.f32.mrf.mxu1 }
 0x1f6   : > { %v766_v41 = vmax.f32 %v746_v39, 0.0  ;;  %v738_v42 = vadd.f32 %v1232_v2, %v737_v40 }
 0x1f7   : > { %v1007_v43 = vpop.f32.mrf.mxu1 }
 0x1f8   : > { %783 = vst.msk [vmem:[%s1240_s9 + $0x70] sm:$0xff] %vm768_vm0, %v766_v41  ;;  %v764_v45 = vmax.f32 %v738_v42, 0.0  ;;  %v749_v46 = vadd.f32 %v1007_v43, %v1232_v2 }
 0x1f9   : > { %v740_v47 = vpop.f32.mrf.mxu1 }
 0x1fa   : > { %781 = vst.msk [vmem:[%s1240_s9 + $0x60] sm:$0xff] %vm768_vm0, %v764_v45  ;;  %v767_v48 = vmax.f32 %v749_v46, 0.0  ;;  %v741_v49 = vadd.f32 %v1232_v2, %v740_v47 }
 0x1fc   : > { %784 = vst.msk [vmem:[%s1240_s9 + $0x78] sm:$0xff] %vm768_vm0, %v767_v48  ;;  %v765_v50 = vmax.f32 %v741_v49, 0.0 }
 0x1fe   : > { %782 = vst.msk [vmem:[%s1240_s9 + $0x68] sm:$0xff] %vm768_vm0, %v765_v50 }
 0x1ff PF: > { %s15_s18 = sadd.s32 1, %s1070_s18  }
 0x200   : > { %p12_p4 = scmp.ge.s32.totalorder %s15_s18, 4  }
 0x202   :  { %14 = sbr.rel (!%p12_p4) target bundleno = 1 (0x1), region = 70 }

</bundles_post_ra>
